<compile_context>
chip_gen: v7x
topology: tpu7x:2x2x1
jax: 0.10.0
libtpu: 0.0.40
codegen_flags: <defaults>
</compile_context>

<pallas_src>
import functools

import jax
import jax.numpy as jnp
from jax.experimental import pallas as pl
from jax.experimental.pallas import tpu as pltpu


def _round_up(n, m):
    return (n + m - 1) // m * m


def rot_pose_kernel(x_ref, w_ref, b_ref, t_ref, rot_ref, pose_ref):
    # x_ref   : (9, S, 128) VMEM   -- feature-major, batch on (sublane, lane)
    # w_ref   : (9, 6)      SMEM   -- fused weight  W = w1 @ w2
    # b_ref   : (1, 6)      SMEM   -- fused bias    b = b1 @ w2 + b2
    # t_ref   : (3, 3)      SMEM   -- T_pose
    # rot_ref : (9, S, 128) VMEM   -- row k = flat R[:, k//3, k%3]
    # pose_ref: (9, S, 128) VMEM   -- row k = flat pose[:, k//3, k%3]

    xin = [x_ref[j] for j in range(9)]          # nine (S, 128) blocks

    # --- fused linear MLP: raw[k] = sum_j W[j,k] * x[j] + b[k] ---
    raw = []
    for k in range(6):
        acc = xin[0] * w_ref[0, k]
        for j in range(1, 9):
            acc = acc + xin[j] * w_ref[j, k]
        raw.append(acc + b_ref[0, k])

    x0, x1, x2 = raw[0], raw[1], raw[2]          # x_raw
    y0, y1, y2 = raw[3], raw[4], raw[5]          # y_raw

    # --- compute_rotation_matrix_from_ortho6d ---
    # normalize x   (v / max(||v||, 1e-8)  ==  v * rsqrt(max(||v||^2, 1e-16)))
    inv_x = jax.lax.rsqrt(jnp.maximum(x0 * x0 + x1 * x1 + x2 * x2, 1e-16))
    xv0, xv1, xv2 = x0 * inv_x, x1 * inv_x, x2 * inv_x

    # z = normalize(cross(x, y_raw))
    z0 = xv1 * y2 - xv2 * y1
    z1 = xv2 * y0 - xv0 * y2
    z2 = xv0 * y1 - xv1 * y0
    inv_z = jax.lax.rsqrt(jnp.maximum(z0 * z0 + z1 * z1 + z2 * z2, 1e-16))
    zv0, zv1, zv2 = z0 * inv_z, z1 * inv_z, z2 * inv_z

    # y = cross(z, x)
    yv0 = zv1 * xv2 - zv2 * xv1
    yv1 = zv2 * xv0 - zv0 * xv2
    yv2 = zv0 * xv1 - zv1 * xv0

    xv = (xv0, xv1, xv2)
    yv = (yv0, yv1, yv2)
    zv = (zv0, zv1, zv2)

    # R[b, i, j]: column 0 = x, column 1 = y, column 2 = z  (row-major flat)
    for i in range(3):
        rot_ref[3 * i + 0] = xv[i]
        rot_ref[3 * i + 1] = yv[i]
        rot_ref[3 * i + 2] = zv[i]

    # --- compute_pose_from_rotation_matrix ---
    # pose[b, j, i] = sum_k R[b, i, k] * T[j, k]
    #              = T[j,0]*x[b,i] + T[j,1]*y[b,i] + T[j,2]*z[b,i]
    t = [[t_ref[j, k] for k in range(3)] for j in range(3)]   # hoist scalars
    for j in range(3):
        t0, t1, t2 = t[j]
        for i in range(3):
            pose_ref[3 * j + i] = t0 * xv[i] + t1 * yv[i] + t2 * zv[i]


@functools.partial(jax.jit, static_argnames=("block_batch",))
def model_forward(in_poses, w1, b1, w2, b2, t_pose, *, block_batch=8192):
    """in_poses: (B, 3, 3) f32. Returns (rot (B,3,3), pose (B,3,3))."""
    B = in_poses.shape[0]

    # Fuse the two bias-free-activation linears once, outside the kernel.
    w = jnp.dot(w1, w2).astype(jnp.float32)                    # (9, 6)
    b = (jnp.dot(b1, w2) + b2).reshape(1, 6).astype(jnp.float32)

    # Batch tile: multiple of 1024 so the (S, 128) block has S % 8 == 0.
    tb = min(block_batch, _round_up(B, 1024))
    b_pad = _round_up(B, tb)
    s = tb // 128

    x = in_poses.reshape(B, 9).astype(jnp.float32).T           # (9, B)
    if b_pad != B:
        x = jnp.pad(x, ((0, 0), (0, b_pad - B)))
    x = x.reshape(9, b_pad // 128, 128)                        # batch-dense

    vblk = pl.BlockSpec((9, s, 128), lambda i: (0, i, 0))
    smem = pl.BlockSpec(memory_space=pltpu.MemorySpace.SMEM)

    rot3, pose3 = pl.pallas_call(
        rot_pose_kernel,
        out_shape=(jax.ShapeDtypeStruct((9, b_pad // 128, 128), jnp.float32),
                   jax.ShapeDtypeStruct((9, b_pad // 128, 128), jnp.float32)),
        grid_spec=pltpu.PrefetchScalarGridSpec(
            num_scalar_prefetch=0,
            grid=(b_pad // tb,),
            in_specs=[vblk, smem, smem, smem],
            out_specs=(vblk, vblk),
        ),
        compiler_params=pltpu.CompilerParams(
            dimension_semantics=("parallel",)),
    )(x, w, b, t_pose)

    rot = rot3.reshape(9, b_pad)[:, :B].T.reshape(B, 3, 3)
    pose = pose3.reshape(9, b_pad)[:, :B].T.reshape(B, 3, 3)
    return rot, pose


def init_params(key):
    # PyTorch nn.Linear weight is (out, in); we pass the transpose (in, out).
    k1, k2, k3, k4 = jax.random.split(key, 4)
    w1 = jax.random.normal(k1, (9, 128), jnp.float32) * 0.1
    b1 = jax.random.normal(k2, (128,), jnp.float32) * 0.1
    w2 = jax.random.normal(k3, (128, 6), jnp.float32) * 0.1
    b2 = jax.random.normal(k4, (6,), jnp.float32) * 0.1
    t_pose = jnp.eye(3, dtype=jnp.float32)   # T_pose_np = identity
    return w1, b1, w2, b2, t_pose


def reference_forward(in_poses, w1, b1, w2, b2, t_pose):
    # Pure-JAX reference using the ORIGINAL (unfused) two-linear MLP.
    B = in_poses.shape[0]
    x = in_poses.reshape(B, 9)
    raw = (x @ w1 + b1) @ w2 + b2
    x_raw, y_raw = raw[:, 0:3], raw[:, 3:6]

    def norm(v):
        m = jnp.maximum(jnp.sqrt(jnp.sum(v * v, axis=1, keepdims=True)), 1e-8)
        return v / m

    xv = norm(x_raw)
    zv = norm(jnp.cross(xv, y_raw))
    yv = jnp.cross(zv, xv)
    R = jnp.stack([xv, yv, zv], axis=2)            # columns x, y, z
    pose = jnp.einsum('bik,jk->bji', R, t_pose)
    return R, pose


if __name__ == "__main__":
    key = jax.random.PRNGKey(0)
    kx, kp = jax.random.split(key)
    w1, b1, w2, b2, t_pose = init_params(kp)

    B = 8
    in_poses = jax.random.normal(kx, (B, 3, 3), jnp.float32)

    rot, pose = model_forward(in_poses, w1, b1, w2, b2, t_pose)
    rot = jax.block_until_ready(rot)
    pose = jax.block_until_ready(pose)

    rot_ref, pose_ref = reference_forward(in_poses, w1, b1, w2, b2, t_pose)
    assert jnp.allclose(rot, rot_ref, atol=1e-4), "rotation matrix mismatch"
    assert jnp.allclose(pose, pose_ref, atol=1e-4), "pose mismatch"

    print("KERNEL_OK")
</pallas_src>

<mosaic_0001>
module attributes {stable_mosaic.version = 11 : i64} {
  func.func @rot_pose_kernel(%arg0: i32, %arg1: memref<9x8x128xf32, #tpu.memory_space<vmem>>, %arg2: memref<9x6xf32, #tpu.memory_space<smem>>, %arg3: memref<1x6xf32, #tpu.memory_space<smem>>, %arg4: memref<3x3xf32, #tpu.memory_space<smem>>, %arg5: memref<9x8x128xf32, #tpu.memory_space<vmem>>, %arg6: memref<9x8x128xf32, #tpu.memory_space<vmem>>) attributes {dimension_semantics = [#tpu.dimension_semantics<parallel>], iteration_bounds = array<i64: 1>, scalar_prefetch = 0 : i64, scratch_operands = 0 : i64, tpu.core_type = #tpu.core_type<tc>, window_params = [{transform_indices = @transform_0, window_bounds = array<i64: 9, 8, 128>}, {transform_indices = @transform_1, window_bounds = array<i64: 9, 6>}, {transform_indices = @transform_2, window_bounds = array<i64: 1, 6>}, {transform_indices = @transform_3, window_bounds = array<i64: 3, 3>}, {transform_indices = @transform_4, window_bounds = array<i64: 9, 8, 128>}, {transform_indices = @transform_5, window_bounds = array<i64: 9, 8, 128>}]} {
    %c0 = arith.constant 0 : index
    %c0_0 = arith.constant 0 : index
    %c0_1 = arith.constant 0 : index
    %0 = vector.load %arg1[%c0, %c0_0, %c0_1] : memref<9x8x128xf32, #tpu.memory_space<vmem>>, vector<1x8x128xf32>
    %1 = vector.shape_cast %0 : vector<1x8x128xf32> to vector<8x128xf32>
    %c1 = arith.constant 1 : index
    %c0_2 = arith.constant 0 : index
    %c0_3 = arith.constant 0 : index
    %2 = vector.load %arg1[%c1, %c0_2, %c0_3] : memref<9x8x128xf32, #tpu.memory_space<vmem>>, vector<1x8x128xf32>
    %3 = vector.shape_cast %2 : vector<1x8x128xf32> to vector<8x128xf32>
    %c2 = arith.constant 2 : index
    %c0_4 = arith.constant 0 : index
    %c0_5 = arith.constant 0 : index
    %4 = vector.load %arg1[%c2, %c0_4, %c0_5] : memref<9x8x128xf32, #tpu.memory_space<vmem>>, vector<1x8x128xf32>
    %5 = vector.shape_cast %4 : vector<1x8x128xf32> to vector<8x128xf32>
    %c3 = arith.constant 3 : index
    %c0_6 = arith.constant 0 : index
    %c0_7 = arith.constant 0 : index
    %6 = vector.load %arg1[%c3, %c0_6, %c0_7] : memref<9x8x128xf32, #tpu.memory_space<vmem>>, vector<1x8x128xf32>
    %7 = vector.shape_cast %6 : vector<1x8x128xf32> to vector<8x128xf32>
    %c4 = arith.constant 4 : index
    %c0_8 = arith.constant 0 : index
    %c0_9 = arith.constant 0 : index
    %8 = vector.load %arg1[%c4, %c0_8, %c0_9] : memref<9x8x128xf32, #tpu.memory_space<vmem>>, vector<1x8x128xf32>
    %9 = vector.shape_cast %8 : vector<1x8x128xf32> to vector<8x128xf32>
    %c5 = arith.constant 5 : index
    %c0_10 = arith.constant 0 : index
    %c0_11 = arith.constant 0 : index
    %10 = vector.load %arg1[%c5, %c0_10, %c0_11] : memref<9x8x128xf32, #tpu.memory_space<vmem>>, vector<1x8x128xf32>
    %11 = vector.shape_cast %10 : vector<1x8x128xf32> to vector<8x128xf32>
    %c6 = arith.constant 6 : index
    %c0_12 = arith.constant 0 : index
    %c0_13 = arith.constant 0 : index
    %12 = vector.load %arg1[%c6, %c0_12, %c0_13] : memref<9x8x128xf32, #tpu.memory_space<vmem>>, vector<1x8x128xf32>
    %13 = vector.shape_cast %12 : vector<1x8x128xf32> to vector<8x128xf32>
    %c7 = arith.constant 7 : index
    %c0_14 = arith.constant 0 : index
    %c0_15 = arith.constant 0 : index
    %14 = vector.load %arg1[%c7, %c0_14, %c0_15] : memref<9x8x128xf32, #tpu.memory_space<vmem>>, vector<1x8x128xf32>
    %15 = vector.shape_cast %14 : vector<1x8x128xf32> to vector<8x128xf32>
    %c8 = arith.constant 8 : index
    %c0_16 = arith.constant 0 : index
    %c0_17 = arith.constant 0 : index
    %16 = vector.load %arg1[%c8, %c0_16, %c0_17] : memref<9x8x128xf32, #tpu.memory_space<vmem>>, vector<1x8x128xf32>
    %17 = vector.shape_cast %16 : vector<1x8x128xf32> to vector<8x128xf32>
    %c0_18 = arith.constant 0 : index
    %c0_19 = arith.constant 0 : index
    %18 = memref.load %arg2[%c0_18, %c0_19] : memref<9x6xf32, #tpu.memory_space<smem>>
    %19 = vector.broadcast %18 : f32 to vector<8x128xf32>
    %20 = arith.mulf %1, %19 : vector<8x128xf32>
    %c1_20 = arith.constant 1 : index
    %c0_21 = arith.constant 0 : index
    %21 = memref.load %arg2[%c1_20, %c0_21] : memref<9x6xf32, #tpu.memory_space<smem>>
    %22 = vector.broadcast %21 : f32 to vector<8x128xf32>
    %23 = arith.mulf %3, %22 : vector<8x128xf32>
    %24 = arith.addf %20, %23 : vector<8x128xf32>
    %c2_22 = arith.constant 2 : index
    %c0_23 = arith.constant 0 : index
    %25 = memref.load %arg2[%c2_22, %c0_23] : memref<9x6xf32, #tpu.memory_space<smem>>
    %26 = vector.broadcast %25 : f32 to vector<8x128xf32>
    %27 = arith.mulf %5, %26 : vector<8x128xf32>
    %28 = arith.addf %24, %27 : vector<8x128xf32>
    %c3_24 = arith.constant 3 : index
    %c0_25 = arith.constant 0 : index
    %29 = memref.load %arg2[%c3_24, %c0_25] : memref<9x6xf32, #tpu.memory_space<smem>>
    %30 = vector.broadcast %29 : f32 to vector<8x128xf32>
    %31 = arith.mulf %7, %30 : vector<8x128xf32>
    %32 = arith.addf %28, %31 : vector<8x128xf32>
    %c4_26 = arith.constant 4 : index
    %c0_27 = arith.constant 0 : index
    %33 = memref.load %arg2[%c4_26, %c0_27] : memref<9x6xf32, #tpu.memory_space<smem>>
    %34 = vector.broadcast %33 : f32 to vector<8x128xf32>
    %35 = arith.mulf %9, %34 : vector<8x128xf32>
    %36 = arith.addf %32, %35 : vector<8x128xf32>
    %c5_28 = arith.constant 5 : index
    %c0_29 = arith.constant 0 : index
    %37 = memref.load %arg2[%c5_28, %c0_29] : memref<9x6xf32, #tpu.memory_space<smem>>
    %38 = vector.broadcast %37 : f32 to vector<8x128xf32>
    %39 = arith.mulf %11, %38 : vector<8x128xf32>
    %40 = arith.addf %36, %39 : vector<8x128xf32>
    %c6_30 = arith.constant 6 : index
    %c0_31 = arith.constant 0 : index
    %41 = memref.load %arg2[%c6_30, %c0_31] : memref<9x6xf32, #tpu.memory_space<smem>>
    %42 = vector.broadcast %41 : f32 to vector<8x128xf32>
    %43 = arith.mulf %13, %42 : vector<8x128xf32>
    %44 = arith.addf %40, %43 : vector<8x128xf32>
    %c7_32 = arith.constant 7 : index
    %c0_33 = arith.constant 0 : index
    %45 = memref.load %arg2[%c7_32, %c0_33] : memref<9x6xf32, #tpu.memory_space<smem>>
    %46 = vector.broadcast %45 : f32 to vector<8x128xf32>
    %47 = arith.mulf %15, %46 : vector<8x128xf32>
    %48 = arith.addf %44, %47 : vector<8x128xf32>
    %c8_34 = arith.constant 8 : index
    %c0_35 = arith.constant 0 : index
    %49 = memref.load %arg2[%c8_34, %c0_35] : memref<9x6xf32, #tpu.memory_space<smem>>
    %50 = vector.broadcast %49 : f32 to vector<8x128xf32>
    %51 = arith.mulf %17, %50 : vector<8x128xf32>
    %52 = arith.addf %48, %51 : vector<8x128xf32>
    %c0_36 = arith.constant 0 : index
    %c0_37 = arith.constant 0 : index
    %53 = memref.load %arg3[%c0_36, %c0_37] : memref<1x6xf32, #tpu.memory_space<smem>>
    %54 = vector.broadcast %53 : f32 to vector<8x128xf32>
    %55 = arith.addf %52, %54 : vector<8x128xf32>
    %c0_38 = arith.constant 0 : index
    %c1_39 = arith.constant 1 : index
    %56 = memref.load %arg2[%c0_38, %c1_39] : memref<9x6xf32, #tpu.memory_space<smem>>
    %57 = vector.broadcast %56 : f32 to vector<8x128xf32>
    %58 = arith.mulf %1, %57 : vector<8x128xf32>
    %c1_40 = arith.constant 1 : index
    %c1_41 = arith.constant 1 : index
    %59 = memref.load %arg2[%c1_40, %c1_41] : memref<9x6xf32, #tpu.memory_space<smem>>
    %60 = vector.broadcast %59 : f32 to vector<8x128xf32>
    %61 = arith.mulf %3, %60 : vector<8x128xf32>
    %62 = arith.addf %58, %61 : vector<8x128xf32>
    %c2_42 = arith.constant 2 : index
    %c1_43 = arith.constant 1 : index
    %63 = memref.load %arg2[%c2_42, %c1_43] : memref<9x6xf32, #tpu.memory_space<smem>>
    %64 = vector.broadcast %63 : f32 to vector<8x128xf32>
    %65 = arith.mulf %5, %64 : vector<8x128xf32>
    %66 = arith.addf %62, %65 : vector<8x128xf32>
    %c3_44 = arith.constant 3 : index
    %c1_45 = arith.constant 1 : index
    %67 = memref.load %arg2[%c3_44, %c1_45] : memref<9x6xf32, #tpu.memory_space<smem>>
    %68 = vector.broadcast %67 : f32 to vector<8x128xf32>
    %69 = arith.mulf %7, %68 : vector<8x128xf32>
    %70 = arith.addf %66, %69 : vector<8x128xf32>
    %c4_46 = arith.constant 4 : index
    %c1_47 = arith.constant 1 : index
    %71 = memref.load %arg2[%c4_46, %c1_47] : memref<9x6xf32, #tpu.memory_space<smem>>
    %72 = vector.broadcast %71 : f32 to vector<8x128xf32>
    %73 = arith.mulf %9, %72 : vector<8x128xf32>
    %74 = arith.addf %70, %73 : vector<8x128xf32>
    %c5_48 = arith.constant 5 : index
    %c1_49 = arith.constant 1 : index
    %75 = memref.load %arg2[%c5_48, %c1_49] : memref<9x6xf32, #tpu.memory_space<smem>>
    %76 = vector.broadcast %75 : f32 to vector<8x128xf32>
    %77 = arith.mulf %11, %76 : vector<8x128xf32>
    %78 = arith.addf %74, %77 : vector<8x128xf32>
    %c6_50 = arith.constant 6 : index
    %c1_51 = arith.constant 1 : index
    %79 = memref.load %arg2[%c6_50, %c1_51] : memref<9x6xf32, #tpu.memory_space<smem>>
    %80 = vector.broadcast %79 : f32 to vector<8x128xf32>
    %81 = arith.mulf %13, %80 : vector<8x128xf32>
    %82 = arith.addf %78, %81 : vector<8x128xf32>
    %c7_52 = arith.constant 7 : index
    %c1_53 = arith.constant 1 : index
    %83 = memref.load %arg2[%c7_52, %c1_53] : memref<9x6xf32, #tpu.memory_space<smem>>
    %84 = vector.broadcast %83 : f32 to vector<8x128xf32>
    %85 = arith.mulf %15, %84 : vector<8x128xf32>
    %86 = arith.addf %82, %85 : vector<8x128xf32>
    %c8_54 = arith.constant 8 : index
    %c1_55 = arith.constant 1 : index
    %87 = memref.load %arg2[%c8_54, %c1_55] : memref<9x6xf32, #tpu.memory_space<smem>>
    %88 = vector.broadcast %87 : f32 to vector<8x128xf32>
    %89 = arith.mulf %17, %88 : vector<8x128xf32>
    %90 = arith.addf %86, %89 : vector<8x128xf32>
    %c0_56 = arith.constant 0 : index
    %c1_57 = arith.constant 1 : index
    %91 = memref.load %arg3[%c0_56, %c1_57] : memref<1x6xf32, #tpu.memory_space<smem>>
    %92 = vector.broadcast %91 : f32 to vector<8x128xf32>
    %93 = arith.addf %90, %92 : vector<8x128xf32>
    %c0_58 = arith.constant 0 : index
    %c2_59 = arith.constant 2 : index
    %94 = memref.load %arg2[%c0_58, %c2_59] : memref<9x6xf32, #tpu.memory_space<smem>>
    %95 = vector.broadcast %94 : f32 to vector<8x128xf32>
    %96 = arith.mulf %1, %95 : vector<8x128xf32>
    %c1_60 = arith.constant 1 : index
    %c2_61 = arith.constant 2 : index
    %97 = memref.load %arg2[%c1_60, %c2_61] : memref<9x6xf32, #tpu.memory_space<smem>>
    %98 = vector.broadcast %97 : f32 to vector<8x128xf32>
    %99 = arith.mulf %3, %98 : vector<8x128xf32>
    %100 = arith.addf %96, %99 : vector<8x128xf32>
    %c2_62 = arith.constant 2 : index
    %c2_63 = arith.constant 2 : index
    %101 = memref.load %arg2[%c2_62, %c2_63] : memref<9x6xf32, #tpu.memory_space<smem>>
    %102 = vector.broadcast %101 : f32 to vector<8x128xf32>
    %103 = arith.mulf %5, %102 : vector<8x128xf32>
    %104 = arith.addf %100, %103 : vector<8x128xf32>
    %c3_64 = arith.constant 3 : index
    %c2_65 = arith.constant 2 : index
    %105 = memref.load %arg2[%c3_64, %c2_65] : memref<9x6xf32, #tpu.memory_space<smem>>
    %106 = vector.broadcast %105 : f32 to vector<8x128xf32>
    %107 = arith.mulf %7, %106 : vector<8x128xf32>
    %108 = arith.addf %104, %107 : vector<8x128xf32>
    %c4_66 = arith.constant 4 : index
    %c2_67 = arith.constant 2 : index
    %109 = memref.load %arg2[%c4_66, %c2_67] : memref<9x6xf32, #tpu.memory_space<smem>>
    %110 = vector.broadcast %109 : f32 to vector<8x128xf32>
    %111 = arith.mulf %9, %110 : vector<8x128xf32>
    %112 = arith.addf %108, %111 : vector<8x128xf32>
    %c5_68 = arith.constant 5 : index
    %c2_69 = arith.constant 2 : index
    %113 = memref.load %arg2[%c5_68, %c2_69] : memref<9x6xf32, #tpu.memory_space<smem>>
    %114 = vector.broadcast %113 : f32 to vector<8x128xf32>
    %115 = arith.mulf %11, %114 : vector<8x128xf32>
    %116 = arith.addf %112, %115 : vector<8x128xf32>
    %c6_70 = arith.constant 6 : index
    %c2_71 = arith.constant 2 : index
    %117 = memref.load %arg2[%c6_70, %c2_71] : memref<9x6xf32, #tpu.memory_space<smem>>
    %118 = vector.broadcast %117 : f32 to vector<8x128xf32>
    %119 = arith.mulf %13, %118 : vector<8x128xf32>
    %120 = arith.addf %116, %119 : vector<8x128xf32>
    %c7_72 = arith.constant 7 : index
    %c2_73 = arith.constant 2 : index
    %121 = memref.load %arg2[%c7_72, %c2_73] : memref<9x6xf32, #tpu.memory_space<smem>>
    %122 = vector.broadcast %121 : f32 to vector<8x128xf32>
    %123 = arith.mulf %15, %122 : vector<8x128xf32>
    %124 = arith.addf %120, %123 : vector<8x128xf32>
    %c8_74 = arith.constant 8 : index
    %c2_75 = arith.constant 2 : index
    %125 = memref.load %arg2[%c8_74, %c2_75] : memref<9x6xf32, #tpu.memory_space<smem>>
    %126 = vector.broadcast %125 : f32 to vector<8x128xf32>
    %127 = arith.mulf %17, %126 : vector<8x128xf32>
    %128 = arith.addf %124, %127 : vector<8x128xf32>
    %c0_76 = arith.constant 0 : index
    %c2_77 = arith.constant 2 : index
    %129 = memref.load %arg3[%c0_76, %c2_77] : memref<1x6xf32, #tpu.memory_space<smem>>
    %130 = vector.broadcast %129 : f32 to vector<8x128xf32>
    %131 = arith.addf %128, %130 : vector<8x128xf32>
    %c0_78 = arith.constant 0 : index
    %c3_79 = arith.constant 3 : index
    %132 = memref.load %arg2[%c0_78, %c3_79] : memref<9x6xf32, #tpu.memory_space<smem>>
    %133 = vector.broadcast %132 : f32 to vector<8x128xf32>
    %134 = arith.mulf %1, %133 : vector<8x128xf32>
    %c1_80 = arith.constant 1 : index
    %c3_81 = arith.constant 3 : index
    %135 = memref.load %arg2[%c1_80, %c3_81] : memref<9x6xf32, #tpu.memory_space<smem>>
    %136 = vector.broadcast %135 : f32 to vector<8x128xf32>
    %137 = arith.mulf %3, %136 : vector<8x128xf32>
    %138 = arith.addf %134, %137 : vector<8x128xf32>
    %c2_82 = arith.constant 2 : index
    %c3_83 = arith.constant 3 : index
    %139 = memref.load %arg2[%c2_82, %c3_83] : memref<9x6xf32, #tpu.memory_space<smem>>
    %140 = vector.broadcast %139 : f32 to vector<8x128xf32>
    %141 = arith.mulf %5, %140 : vector<8x128xf32>
    %142 = arith.addf %138, %141 : vector<8x128xf32>
    %c3_84 = arith.constant 3 : index
    %c3_85 = arith.constant 3 : index
    %143 = memref.load %arg2[%c3_84, %c3_85] : memref<9x6xf32, #tpu.memory_space<smem>>
    %144 = vector.broadcast %143 : f32 to vector<8x128xf32>
    %145 = arith.mulf %7, %144 : vector<8x128xf32>
    %146 = arith.addf %142, %145 : vector<8x128xf32>
    %c4_86 = arith.constant 4 : index
    %c3_87 = arith.constant 3 : index
    %147 = memref.load %arg2[%c4_86, %c3_87] : memref<9x6xf32, #tpu.memory_space<smem>>
    %148 = vector.broadcast %147 : f32 to vector<8x128xf32>
    %149 = arith.mulf %9, %148 : vector<8x128xf32>
    %150 = arith.addf %146, %149 : vector<8x128xf32>
    %c5_88 = arith.constant 5 : index
    %c3_89 = arith.constant 3 : index
    %151 = memref.load %arg2[%c5_88, %c3_89] : memref<9x6xf32, #tpu.memory_space<smem>>
    %152 = vector.broadcast %151 : f32 to vector<8x128xf32>
    %153 = arith.mulf %11, %152 : vector<8x128xf32>
    %154 = arith.addf %150, %153 : vector<8x128xf32>
    %c6_90 = arith.constant 6 : index
    %c3_91 = arith.constant 3 : index
    %155 = memref.load %arg2[%c6_90, %c3_91] : memref<9x6xf32, #tpu.memory_space<smem>>
    %156 = vector.broadcast %155 : f32 to vector<8x128xf32>
    %157 = arith.mulf %13, %156 : vector<8x128xf32>
    %158 = arith.addf %154, %157 : vector<8x128xf32>
    %c7_92 = arith.constant 7 : index
    %c3_93 = arith.constant 3 : index
    %159 = memref.load %arg2[%c7_92, %c3_93] : memref<9x6xf32, #tpu.memory_space<smem>>
    %160 = vector.broadcast %159 : f32 to vector<8x128xf32>
    %161 = arith.mulf %15, %160 : vector<8x128xf32>
    %162 = arith.addf %158, %161 : vector<8x128xf32>
    %c8_94 = arith.constant 8 : index
    %c3_95 = arith.constant 3 : index
    %163 = memref.load %arg2[%c8_94, %c3_95] : memref<9x6xf32, #tpu.memory_space<smem>>
    %164 = vector.broadcast %163 : f32 to vector<8x128xf32>
    %165 = arith.mulf %17, %164 : vector<8x128xf32>
    %166 = arith.addf %162, %165 : vector<8x128xf32>
    %c0_96 = arith.constant 0 : index
    %c3_97 = arith.constant 3 : index
    %167 = memref.load %arg3[%c0_96, %c3_97] : memref<1x6xf32, #tpu.memory_space<smem>>
    %168 = vector.broadcast %167 : f32 to vector<8x128xf32>
    %169 = arith.addf %166, %168 : vector<8x128xf32>
    %c0_98 = arith.constant 0 : index
    %c4_99 = arith.constant 4 : index
    %170 = memref.load %arg2[%c0_98, %c4_99] : memref<9x6xf32, #tpu.memory_space<smem>>
    %171 = vector.broadcast %170 : f32 to vector<8x128xf32>
    %172 = arith.mulf %1, %171 : vector<8x128xf32>
    %c1_100 = arith.constant 1 : index
    %c4_101 = arith.constant 4 : index
    %173 = memref.load %arg2[%c1_100, %c4_101] : memref<9x6xf32, #tpu.memory_space<smem>>
    %174 = vector.broadcast %173 : f32 to vector<8x128xf32>
    %175 = arith.mulf %3, %174 : vector<8x128xf32>
    %176 = arith.addf %172, %175 : vector<8x128xf32>
    %c2_102 = arith.constant 2 : index
    %c4_103 = arith.constant 4 : index
    %177 = memref.load %arg2[%c2_102, %c4_103] : memref<9x6xf32, #tpu.memory_space<smem>>
    %178 = vector.broadcast %177 : f32 to vector<8x128xf32>
    %179 = arith.mulf %5, %178 : vector<8x128xf32>
    %180 = arith.addf %176, %179 : vector<8x128xf32>
    %c3_104 = arith.constant 3 : index
    %c4_105 = arith.constant 4 : index
    %181 = memref.load %arg2[%c3_104, %c4_105] : memref<9x6xf32, #tpu.memory_space<smem>>
    %182 = vector.broadcast %181 : f32 to vector<8x128xf32>
    %183 = arith.mulf %7, %182 : vector<8x128xf32>
    %184 = arith.addf %180, %183 : vector<8x128xf32>
    %c4_106 = arith.constant 4 : index
    %c4_107 = arith.constant 4 : index
    %185 = memref.load %arg2[%c4_106, %c4_107] : memref<9x6xf32, #tpu.memory_space<smem>>
    %186 = vector.broadcast %185 : f32 to vector<8x128xf32>
    %187 = arith.mulf %9, %186 : vector<8x128xf32>
    %188 = arith.addf %184, %187 : vector<8x128xf32>
    %c5_108 = arith.constant 5 : index
    %c4_109 = arith.constant 4 : index
    %189 = memref.load %arg2[%c5_108, %c4_109] : memref<9x6xf32, #tpu.memory_space<smem>>
    %190 = vector.broadcast %189 : f32 to vector<8x128xf32>
    %191 = arith.mulf %11, %190 : vector<8x128xf32>
    %192 = arith.addf %188, %191 : vector<8x128xf32>
    %c6_110 = arith.constant 6 : index
    %c4_111 = arith.constant 4 : index
    %193 = memref.load %arg2[%c6_110, %c4_111] : memref<9x6xf32, #tpu.memory_space<smem>>
    %194 = vector.broadcast %193 : f32 to vector<8x128xf32>
    %195 = arith.mulf %13, %194 : vector<8x128xf32>
    %196 = arith.addf %192, %195 : vector<8x128xf32>
    %c7_112 = arith.constant 7 : index
    %c4_113 = arith.constant 4 : index
    %197 = memref.load %arg2[%c7_112, %c4_113] : memref<9x6xf32, #tpu.memory_space<smem>>
    %198 = vector.broadcast %197 : f32 to vector<8x128xf32>
    %199 = arith.mulf %15, %198 : vector<8x128xf32>
    %200 = arith.addf %196, %199 : vector<8x128xf32>
    %c8_114 = arith.constant 8 : index
    %c4_115 = arith.constant 4 : index
    %201 = memref.load %arg2[%c8_114, %c4_115] : memref<9x6xf32, #tpu.memory_space<smem>>
    %202 = vector.broadcast %201 : f32 to vector<8x128xf32>
    %203 = arith.mulf %17, %202 : vector<8x128xf32>
    %204 = arith.addf %200, %203 : vector<8x128xf32>
    %c0_116 = arith.constant 0 : index
    %c4_117 = arith.constant 4 : index
    %205 = memref.load %arg3[%c0_116, %c4_117] : memref<1x6xf32, #tpu.memory_space<smem>>
    %206 = vector.broadcast %205 : f32 to vector<8x128xf32>
    %207 = arith.addf %204, %206 : vector<8x128xf32>
    %c0_118 = arith.constant 0 : index
    %c5_119 = arith.constant 5 : index
    %208 = memref.load %arg2[%c0_118, %c5_119] : memref<9x6xf32, #tpu.memory_space<smem>>
    %209 = vector.broadcast %208 : f32 to vector<8x128xf32>
    %210 = arith.mulf %1, %209 : vector<8x128xf32>
    %c1_120 = arith.constant 1 : index
    %c5_121 = arith.constant 5 : index
    %211 = memref.load %arg2[%c1_120, %c5_121] : memref<9x6xf32, #tpu.memory_space<smem>>
    %212 = vector.broadcast %211 : f32 to vector<8x128xf32>
    %213 = arith.mulf %3, %212 : vector<8x128xf32>
    %214 = arith.addf %210, %213 : vector<8x128xf32>
    %c2_122 = arith.constant 2 : index
    %c5_123 = arith.constant 5 : index
    %215 = memref.load %arg2[%c2_122, %c5_123] : memref<9x6xf32, #tpu.memory_space<smem>>
    %216 = vector.broadcast %215 : f32 to vector<8x128xf32>
    %217 = arith.mulf %5, %216 : vector<8x128xf32>
    %218 = arith.addf %214, %217 : vector<8x128xf32>
    %c3_124 = arith.constant 3 : index
    %c5_125 = arith.constant 5 : index
    %219 = memref.load %arg2[%c3_124, %c5_125] : memref<9x6xf32, #tpu.memory_space<smem>>
    %220 = vector.broadcast %219 : f32 to vector<8x128xf32>
    %221 = arith.mulf %7, %220 : vector<8x128xf32>
    %222 = arith.addf %218, %221 : vector<8x128xf32>
    %c4_126 = arith.constant 4 : index
    %c5_127 = arith.constant 5 : index
    %223 = memref.load %arg2[%c4_126, %c5_127] : memref<9x6xf32, #tpu.memory_space<smem>>
    %224 = vector.broadcast %223 : f32 to vector<8x128xf32>
    %225 = arith.mulf %9, %224 : vector<8x128xf32>
    %226 = arith.addf %222, %225 : vector<8x128xf32>
    %c5_128 = arith.constant 5 : index
    %c5_129 = arith.constant 5 : index
    %227 = memref.load %arg2[%c5_128, %c5_129] : memref<9x6xf32, #tpu.memory_space<smem>>
    %228 = vector.broadcast %227 : f32 to vector<8x128xf32>
    %229 = arith.mulf %11, %228 : vector<8x128xf32>
    %230 = arith.addf %226, %229 : vector<8x128xf32>
    %c6_130 = arith.constant 6 : index
    %c5_131 = arith.constant 5 : index
    %231 = memref.load %arg2[%c6_130, %c5_131] : memref<9x6xf32, #tpu.memory_space<smem>>
    %232 = vector.broadcast %231 : f32 to vector<8x128xf32>
    %233 = arith.mulf %13, %232 : vector<8x128xf32>
    %234 = arith.addf %230, %233 : vector<8x128xf32>
    %c7_132 = arith.constant 7 : index
    %c5_133 = arith.constant 5 : index
    %235 = memref.load %arg2[%c7_132, %c5_133] : memref<9x6xf32, #tpu.memory_space<smem>>
    %236 = vector.broadcast %235 : f32 to vector<8x128xf32>
    %237 = arith.mulf %15, %236 : vector<8x128xf32>
    %238 = arith.addf %234, %237 : vector<8x128xf32>
    %c8_134 = arith.constant 8 : index
    %c5_135 = arith.constant 5 : index
    %239 = memref.load %arg2[%c8_134, %c5_135] : memref<9x6xf32, #tpu.memory_space<smem>>
    %240 = vector.broadcast %239 : f32 to vector<8x128xf32>
    %241 = arith.mulf %17, %240 : vector<8x128xf32>
    %242 = arith.addf %238, %241 : vector<8x128xf32>
    %c0_136 = arith.constant 0 : index
    %c5_137 = arith.constant 5 : index
    %243 = memref.load %arg3[%c0_136, %c5_137] : memref<1x6xf32, #tpu.memory_space<smem>>
    %244 = vector.broadcast %243 : f32 to vector<8x128xf32>
    %245 = arith.addf %242, %244 : vector<8x128xf32>
    %246 = arith.mulf %55, %55 : vector<8x128xf32>
    %247 = arith.mulf %93, %93 : vector<8x128xf32>
    %248 = arith.addf %246, %247 : vector<8x128xf32>
    %249 = arith.mulf %131, %131 : vector<8x128xf32>
    %250 = arith.addf %248, %249 : vector<8x128xf32>
    %cst = arith.constant 1.000000e-16 : f32
    %251 = vector.broadcast %cst : f32 to vector<8x128xf32>
    %252 = arith.maximumf %250, %251 : vector<8x128xf32>
    %253 = math.rsqrt %252 : vector<8x128xf32>
    %254 = arith.mulf %55, %253 : vector<8x128xf32>
    %255 = arith.mulf %93, %253 : vector<8x128xf32>
    %256 = arith.mulf %131, %253 : vector<8x128xf32>
    %257 = arith.mulf %255, %245 : vector<8x128xf32>
    %258 = arith.mulf %256, %207 : vector<8x128xf32>
    %259 = arith.subf %257, %258 : vector<8x128xf32>
    %260 = arith.mulf %256, %169 : vector<8x128xf32>
    %261 = arith.mulf %254, %245 : vector<8x128xf32>
    %262 = arith.subf %260, %261 : vector<8x128xf32>
    %263 = arith.mulf %254, %207 : vector<8x128xf32>
    %264 = arith.mulf %255, %169 : vector<8x128xf32>
    %265 = arith.subf %263, %264 : vector<8x128xf32>
    %266 = arith.mulf %259, %259 : vector<8x128xf32>
    %267 = arith.mulf %262, %262 : vector<8x128xf32>
    %268 = arith.addf %266, %267 : vector<8x128xf32>
    %269 = arith.mulf %265, %265 : vector<8x128xf32>
    %270 = arith.addf %268, %269 : vector<8x128xf32>
    %cst_138 = arith.constant 1.000000e-16 : f32
    %271 = vector.broadcast %cst_138 : f32 to vector<8x128xf32>
    %272 = arith.maximumf %270, %271 : vector<8x128xf32>
    %273 = math.rsqrt %272 : vector<8x128xf32>
    %274 = arith.mulf %259, %273 : vector<8x128xf32>
    %275 = arith.mulf %262, %273 : vector<8x128xf32>
    %276 = arith.mulf %265, %273 : vector<8x128xf32>
    %277 = arith.mulf %275, %256 : vector<8x128xf32>
    %278 = arith.mulf %276, %255 : vector<8x128xf32>
    %279 = arith.subf %277, %278 : vector<8x128xf32>
    %280 = arith.mulf %276, %254 : vector<8x128xf32>
    %281 = arith.mulf %274, %256 : vector<8x128xf32>
    %282 = arith.subf %280, %281 : vector<8x128xf32>
    %283 = arith.mulf %274, %255 : vector<8x128xf32>
    %284 = arith.mulf %275, %254 : vector<8x128xf32>
    %285 = arith.subf %283, %284 : vector<8x128xf32>
    %c0_139 = arith.constant 0 : index
    %c0_140 = arith.constant 0 : index
    %c0_141 = arith.constant 0 : index
    %286 = vector.load %arg5[%c0_139, %c0_140, %c0_141] : memref<9x8x128xf32, #tpu.memory_space<vmem>>, vector<1x8x128xf32>
    %287 = vector.shape_cast %286 : vector<1x8x128xf32> to vector<8x128xf32>
    %288 = vector.shape_cast %254 : vector<8x128xf32> to vector<1x8x128xf32>
    tpu.vector_store %arg5[%c0_139, %c0_140, %c0_141], %288 {strides = array<i32>} : memref<9x8x128xf32, #tpu.memory_space<vmem>>, vector<1x8x128xf32>,
    %c1_142 = arith.constant 1 : index
    %c0_143 = arith.constant 0 : index
    %c0_144 = arith.constant 0 : index
    %289 = vector.load %arg5[%c1_142, %c0_143, %c0_144] : memref<9x8x128xf32, #tpu.memory_space<vmem>>, vector<1x8x128xf32>
    %290 = vector.shape_cast %289 : vector<1x8x128xf32> to vector<8x128xf32>
    %291 = vector.shape_cast %279 : vector<8x128xf32> to vector<1x8x128xf32>
    tpu.vector_store %arg5[%c1_142, %c0_143, %c0_144], %291 {strides = array<i32>} : memref<9x8x128xf32, #tpu.memory_space<vmem>>, vector<1x8x128xf32>,
    %c2_145 = arith.constant 2 : index
    %c0_146 = arith.constant 0 : index
    %c0_147 = arith.constant 0 : index
    %292 = vector.load %arg5[%c2_145, %c0_146, %c0_147] : memref<9x8x128xf32, #tpu.memory_space<vmem>>, vector<1x8x128xf32>
    %293 = vector.shape_cast %292 : vector<1x8x128xf32> to vector<8x128xf32>
    %294 = vector.shape_cast %274 : vector<8x128xf32> to vector<1x8x128xf32>
    tpu.vector_store %arg5[%c2_145, %c0_146, %c0_147], %294 {strides = array<i32>} : memref<9x8x128xf32, #tpu.memory_space<vmem>>, vector<1x8x128xf32>,
    %c3_148 = arith.constant 3 : index
    %c0_149 = arith.constant 0 : index
    %c0_150 = arith.constant 0 : index
    %295 = vector.load %arg5[%c3_148, %c0_149, %c0_150] : memref<9x8x128xf32, #tpu.memory_space<vmem>>, vector<1x8x128xf32>
    %296 = vector.shape_cast %295 : vector<1x8x128xf32> to vector<8x128xf32>
    %297 = vector.shape_cast %255 : vector<8x128xf32> to vector<1x8x128xf32>
    tpu.vector_store %arg5[%c3_148, %c0_149, %c0_150], %297 {strides = array<i32>} : memref<9x8x128xf32, #tpu.memory_space<vmem>>, vector<1x8x128xf32>,
    %c4_151 = arith.constant 4 : index
    %c0_152 = arith.constant 0 : index
    %c0_153 = arith.constant 0 : index
    %298 = vector.load %arg5[%c4_151, %c0_152, %c0_153] : memref<9x8x128xf32, #tpu.memory_space<vmem>>, vector<1x8x128xf32>
    %299 = vector.shape_cast %298 : vector<1x8x128xf32> to vector<8x128xf32>
    %300 = vector.shape_cast %282 : vector<8x128xf32> to vector<1x8x128xf32>
    tpu.vector_store %arg5[%c4_151, %c0_152, %c0_153], %300 {strides = array<i32>} : memref<9x8x128xf32, #tpu.memory_space<vmem>>, vector<1x8x128xf32>,
    %c5_154 = arith.constant 5 : index
    %c0_155 = arith.constant 0 : index
    %c0_156 = arith.constant 0 : index
    %301 = vector.load %arg5[%c5_154, %c0_155, %c0_156] : memref<9x8x128xf32, #tpu.memory_space<vmem>>, vector<1x8x128xf32>
    %302 = vector.shape_cast %301 : vector<1x8x128xf32> to vector<8x128xf32>
    %303 = vector.shape_cast %275 : vector<8x128xf32> to vector<1x8x128xf32>
    tpu.vector_store %arg5[%c5_154, %c0_155, %c0_156], %303 {strides = array<i32>} : memref<9x8x128xf32, #tpu.memory_space<vmem>>, vector<1x8x128xf32>,
    %c6_157 = arith.constant 6 : index
    %c0_158 = arith.constant 0 : index
    %c0_159 = arith.constant 0 : index
    %304 = vector.load %arg5[%c6_157, %c0_158, %c0_159] : memref<9x8x128xf32, #tpu.memory_space<vmem>>, vector<1x8x128xf32>
    %305 = vector.shape_cast %304 : vector<1x8x128xf32> to vector<8x128xf32>
    %306 = vector.shape_cast %256 : vector<8x128xf32> to vector<1x8x128xf32>
    tpu.vector_store %arg5[%c6_157, %c0_158, %c0_159], %306 {strides = array<i32>} : memref<9x8x128xf32, #tpu.memory_space<vmem>>, vector<1x8x128xf32>,
    %c7_160 = arith.constant 7 : index
    %c0_161 = arith.constant 0 : index
    %c0_162 = arith.constant 0 : index
    %307 = vector.load %arg5[%c7_160, %c0_161, %c0_162] : memref<9x8x128xf32, #tpu.memory_space<vmem>>, vector<1x8x128xf32>
    %308 = vector.shape_cast %307 : vector<1x8x128xf32> to vector<8x128xf32>
    %309 = vector.shape_cast %285 : vector<8x128xf32> to vector<1x8x128xf32>
    tpu.vector_store %arg5[%c7_160, %c0_161, %c0_162], %309 {strides = array<i32>} : memref<9x8x128xf32, #tpu.memory_space<vmem>>, vector<1x8x128xf32>,
    %c8_163 = arith.constant 8 : index
    %c0_164 = arith.constant 0 : index
    %c0_165 = arith.constant 0 : index
    %310 = vector.load %arg5[%c8_163, %c0_164, %c0_165] : memref<9x8x128xf32, #tpu.memory_space<vmem>>, vector<1x8x128xf32>
    %311 = vector.shape_cast %310 : vector<1x8x128xf32> to vector<8x128xf32>
    %312 = vector.shape_cast %276 : vector<8x128xf32> to vector<1x8x128xf32>
    tpu.vector_store %arg5[%c8_163, %c0_164, %c0_165], %312 {strides = array<i32>} : memref<9x8x128xf32, #tpu.memory_space<vmem>>, vector<1x8x128xf32>,
    %c0_166 = arith.constant 0 : index
    %c0_167 = arith.constant 0 : index
    %313 = memref.load %arg4[%c0_166, %c0_167] : memref<3x3xf32, #tpu.memory_space<smem>>
    %c0_168 = arith.constant 0 : index
    %c1_169 = arith.constant 1 : index
    %314 = memref.load %arg4[%c0_168, %c1_169] : memref<3x3xf32, #tpu.memory_space<smem>>
    %c0_170 = arith.constant 0 : index
    %c2_171 = arith.constant 2 : index
    %315 = memref.load %arg4[%c0_170, %c2_171] : memref<3x3xf32, #tpu.memory_space<smem>>
    %c1_172 = arith.constant 1 : index
    %c0_173 = arith.constant 0 : index
    %316 = memref.load %arg4[%c1_172, %c0_173] : memref<3x3xf32, #tpu.memory_space<smem>>
    %c1_174 = arith.constant 1 : index
    %c1_175 = arith.constant 1 : index
    %317 = memref.load %arg4[%c1_174, %c1_175] : memref<3x3xf32, #tpu.memory_space<smem>>
    %c1_176 = arith.constant 1 : index
    %c2_177 = arith.constant 2 : index
    %318 = memref.load %arg4[%c1_176, %c2_177] : memref<3x3xf32, #tpu.memory_space<smem>>
    %c2_178 = arith.constant 2 : index
    %c0_179 = arith.constant 0 : index
    %319 = memref.load %arg4[%c2_178, %c0_179] : memref<3x3xf32, #tpu.memory_space<smem>>
    %c2_180 = arith.constant 2 : index
    %c1_181 = arith.constant 1 : index
    %320 = memref.load %arg4[%c2_180, %c1_181] : memref<3x3xf32, #tpu.memory_space<smem>>
    %c2_182 = arith.constant 2 : index
    %c2_183 = arith.constant 2 : index
    %321 = memref.load %arg4[%c2_182, %c2_183] : memref<3x3xf32, #tpu.memory_space<smem>>
    %322 = vector.broadcast %313 : f32 to vector<8x128xf32>
    %323 = arith.mulf %322, %254 : vector<8x128xf32>
    %324 = vector.broadcast %314 : f32 to vector<8x128xf32>
    %325 = arith.mulf %324, %279 : vector<8x128xf32>
    %326 = arith.addf %323, %325 : vector<8x128xf32>
    %327 = vector.broadcast %315 : f32 to vector<8x128xf32>
    %328 = arith.mulf %327, %274 : vector<8x128xf32>
    %329 = arith.addf %326, %328 : vector<8x128xf32>
    %c0_184 = arith.constant 0 : index
    %c0_185 = arith.constant 0 : index
    %c0_186 = arith.constant 0 : index
    %330 = vector.load %arg6[%c0_184, %c0_185, %c0_186] : memref<9x8x128xf32, #tpu.memory_space<vmem>>, vector<1x8x128xf32>
    %331 = vector.shape_cast %330 : vector<1x8x128xf32> to vector<8x128xf32>
    %332 = vector.shape_cast %329 : vector<8x128xf32> to vector<1x8x128xf32>
    tpu.vector_store %arg6[%c0_184, %c0_185, %c0_186], %332 {strides = array<i32>} : memref<9x8x128xf32, #tpu.memory_space<vmem>>, vector<1x8x128xf32>,
    %333 = vector.broadcast %313 : f32 to vector<8x128xf32>
    %334 = arith.mulf %333, %255 : vector<8x128xf32>
    %335 = vector.broadcast %314 : f32 to vector<8x128xf32>
    %336 = arith.mulf %335, %282 : vector<8x128xf32>
    %337 = arith.addf %334, %336 : vector<8x128xf32>
    %338 = vector.broadcast %315 : f32 to vector<8x128xf32>
    %339 = arith.mulf %338, %275 : vector<8x128xf32>
    %340 = arith.addf %337, %339 : vector<8x128xf32>
    %c1_187 = arith.constant 1 : index
    %c0_188 = arith.constant 0 : index
    %c0_189 = arith.constant 0 : index
    %341 = vector.load %arg6[%c1_187, %c0_188, %c0_189] : memref<9x8x128xf32, #tpu.memory_space<vmem>>, vector<1x8x128xf32>
    %342 = vector.shape_cast %341 : vector<1x8x128xf32> to vector<8x128xf32>
    %343 = vector.shape_cast %340 : vector<8x128xf32> to vector<1x8x128xf32>
    tpu.vector_store %arg6[%c1_187, %c0_188, %c0_189], %343 {strides = array<i32>} : memref<9x8x128xf32, #tpu.memory_space<vmem>>, vector<1x8x128xf32>,
    %344 = vector.broadcast %313 : f32 to vector<8x128xf32>
    %345 = arith.mulf %344, %256 : vector<8x128xf32>
    %346 = vector.broadcast %314 : f32 to vector<8x128xf32>
    %347 = arith.mulf %346, %285 : vector<8x128xf32>
    %348 = arith.addf %345, %347 : vector<8x128xf32>
    %349 = vector.broadcast %315 : f32 to vector<8x128xf32>
    %350 = arith.mulf %349, %276 : vector<8x128xf32>
    %351 = arith.addf %348, %350 : vector<8x128xf32>
    %c2_190 = arith.constant 2 : index
    %c0_191 = arith.constant 0 : index
    %c0_192 = arith.constant 0 : index
    %352 = vector.load %arg6[%c2_190, %c0_191, %c0_192] : memref<9x8x128xf32, #tpu.memory_space<vmem>>, vector<1x8x128xf32>
    %353 = vector.shape_cast %352 : vector<1x8x128xf32> to vector<8x128xf32>
    %354 = vector.shape_cast %351 : vector<8x128xf32> to vector<1x8x128xf32>
    tpu.vector_store %arg6[%c2_190, %c0_191, %c0_192], %354 {strides = array<i32>} : memref<9x8x128xf32, #tpu.memory_space<vmem>>, vector<1x8x128xf32>,
    %355 = vector.broadcast %316 : f32 to vector<8x128xf32>
    %356 = arith.mulf %355, %254 : vector<8x128xf32>
    %357 = vector.broadcast %317 : f32 to vector<8x128xf32>
    %358 = arith.mulf %357, %279 : vector<8x128xf32>
    %359 = arith.addf %356, %358 : vector<8x128xf32>
    %360 = vector.broadcast %318 : f32 to vector<8x128xf32>
    %361 = arith.mulf %360, %274 : vector<8x128xf32>
    %362 = arith.addf %359, %361 : vector<8x128xf32>
    %c3_193 = arith.constant 3 : index
    %c0_194 = arith.constant 0 : index
    %c0_195 = arith.constant 0 : index
    %363 = vector.load %arg6[%c3_193, %c0_194, %c0_195] : memref<9x8x128xf32, #tpu.memory_space<vmem>>, vector<1x8x128xf32>
    %364 = vector.shape_cast %363 : vector<1x8x128xf32> to vector<8x128xf32>
    %365 = vector.shape_cast %362 : vector<8x128xf32> to vector<1x8x128xf32>
    tpu.vector_store %arg6[%c3_193, %c0_194, %c0_195], %365 {strides = array<i32>} : memref<9x8x128xf32, #tpu.memory_space<vmem>>, vector<1x8x128xf32>,
    %366 = vector.broadcast %316 : f32 to vector<8x128xf32>
    %367 = arith.mulf %366, %255 : vector<8x128xf32>
    %368 = vector.broadcast %317 : f32 to vector<8x128xf32>
    %369 = arith.mulf %368, %282 : vector<8x128xf32>
    %370 = arith.addf %367, %369 : vector<8x128xf32>
    %371 = vector.broadcast %318 : f32 to vector<8x128xf32>
    %372 = arith.mulf %371, %275 : vector<8x128xf32>
    %373 = arith.addf %370, %372 : vector<8x128xf32>
    %c4_196 = arith.constant 4 : index
    %c0_197 = arith.constant 0 : index
    %c0_198 = arith.constant 0 : index
    %374 = vector.load %arg6[%c4_196, %c0_197, %c0_198] : memref<9x8x128xf32, #tpu.memory_space<vmem>>, vector<1x8x128xf32>
    %375 = vector.shape_cast %374 : vector<1x8x128xf32> to vector<8x128xf32>
    %376 = vector.shape_cast %373 : vector<8x128xf32> to vector<1x8x128xf32>
    tpu.vector_store %arg6[%c4_196, %c0_197, %c0_198], %376 {strides = array<i32>} : memref<9x8x128xf32, #tpu.memory_space<vmem>>, vector<1x8x128xf32>,
    %377 = vector.broadcast %316 : f32 to vector<8x128xf32>
    %378 = arith.mulf %377, %256 : vector<8x128xf32>
    %379 = vector.broadcast %317 : f32 to vector<8x128xf32>
    %380 = arith.mulf %379, %285 : vector<8x128xf32>
    %381 = arith.addf %378, %380 : vector<8x128xf32>
    %382 = vector.broadcast %318 : f32 to vector<8x128xf32>
    %383 = arith.mulf %382, %276 : vector<8x128xf32>
    %384 = arith.addf %381, %383 : vector<8x128xf32>
    %c5_199 = arith.constant 5 : index
    %c0_200 = arith.constant 0 : index
    %c0_201 = arith.constant 0 : index
    %385 = vector.load %arg6[%c5_199, %c0_200, %c0_201] : memref<9x8x128xf32, #tpu.memory_space<vmem>>, vector<1x8x128xf32>
    %386 = vector.shape_cast %385 : vector<1x8x128xf32> to vector<8x128xf32>
    %387 = vector.shape_cast %384 : vector<8x128xf32> to vector<1x8x128xf32>
    tpu.vector_store %arg6[%c5_199, %c0_200, %c0_201], %387 {strides = array<i32>} : memref<9x8x128xf32, #tpu.memory_space<vmem>>, vector<1x8x128xf32>,
    %388 = vector.broadcast %319 : f32 to vector<8x128xf32>
    %389 = arith.mulf %388, %254 : vector<8x128xf32>
    %390 = vector.broadcast %320 : f32 to vector<8x128xf32>
    %391 = arith.mulf %390, %279 : vector<8x128xf32>
    %392 = arith.addf %389, %391 : vector<8x128xf32>
    %393 = vector.broadcast %321 : f32 to vector<8x128xf32>
    %394 = arith.mulf %393, %274 : vector<8x128xf32>
    %395 = arith.addf %392, %394 : vector<8x128xf32>
    %c6_202 = arith.constant 6 : index
    %c0_203 = arith.constant 0 : index
    %c0_204 = arith.constant 0 : index
    %396 = vector.load %arg6[%c6_202, %c0_203, %c0_204] : memref<9x8x128xf32, #tpu.memory_space<vmem>>, vector<1x8x128xf32>
    %397 = vector.shape_cast %396 : vector<1x8x128xf32> to vector<8x128xf32>
    %398 = vector.shape_cast %395 : vector<8x128xf32> to vector<1x8x128xf32>
    tpu.vector_store %arg6[%c6_202, %c0_203, %c0_204], %398 {strides = array<i32>} : memref<9x8x128xf32, #tpu.memory_space<vmem>>, vector<1x8x128xf32>,
    %399 = vector.broadcast %319 : f32 to vector<8x128xf32>
    %400 = arith.mulf %399, %255 : vector<8x128xf32>
    %401 = vector.broadcast %320 : f32 to vector<8x128xf32>
    %402 = arith.mulf %401, %282 : vector<8x128xf32>
    %403 = arith.addf %400, %402 : vector<8x128xf32>
    %404 = vector.broadcast %321 : f32 to vector<8x128xf32>
    %405 = arith.mulf %404, %275 : vector<8x128xf32>
    %406 = arith.addf %403, %405 : vector<8x128xf32>
    %c7_205 = arith.constant 7 : index
    %c0_206 = arith.constant 0 : index
    %c0_207 = arith.constant 0 : index
    %407 = vector.load %arg6[%c7_205, %c0_206, %c0_207] : memref<9x8x128xf32, #tpu.memory_space<vmem>>, vector<1x8x128xf32>
    %408 = vector.shape_cast %407 : vector<1x8x128xf32> to vector<8x128xf32>
    %409 = vector.shape_cast %406 : vector<8x128xf32> to vector<1x8x128xf32>
    tpu.vector_store %arg6[%c7_205, %c0_206, %c0_207], %409 {strides = array<i32>} : memref<9x8x128xf32, #tpu.memory_space<vmem>>, vector<1x8x128xf32>,
    %410 = vector.broadcast %319 : f32 to vector<8x128xf32>
    %411 = arith.mulf %410, %256 : vector<8x128xf32>
    %412 = vector.broadcast %320 : f32 to vector<8x128xf32>
    %413 = arith.mulf %412, %285 : vector<8x128xf32>
    %414 = arith.addf %411, %413 : vector<8x128xf32>
    %415 = vector.broadcast %321 : f32 to vector<8x128xf32>
    %416 = arith.mulf %415, %276 : vector<8x128xf32>
    %417 = arith.addf %414, %416 : vector<8x128xf32>
    %c8_208 = arith.constant 8 : index
    %c0_209 = arith.constant 0 : index
    %c0_210 = arith.constant 0 : index
    %418 = vector.load %arg6[%c8_208, %c0_209, %c0_210] : memref<9x8x128xf32, #tpu.memory_space<vmem>>, vector<1x8x128xf32>
    %419 = vector.shape_cast %418 : vector<1x8x128xf32> to vector<8x128xf32>
    %420 = vector.shape_cast %417 : vector<8x128xf32> to vector<1x8x128xf32>
    tpu.vector_store %arg6[%c8_208, %c0_209, %c0_210], %420 {strides = array<i32>} : memref<9x8x128xf32, #tpu.memory_space<vmem>>, vector<1x8x128xf32>,
    return
  }
  func.func @transform_0(%arg0: i32) -> (i32, i32, i32) {
    %c0_i32 = arith.constant 0 : i32
    %c0_i32_0 = arith.constant 0 : i32
    %c0_i32_1 = arith.constant 0 : i32
    return %c0_i32, %arg0, %c0_i32_0 : i32, i32, i32
  }
  func.func @transform_1(%arg0: i32) -> (i32, i32) {
    %c0_i32 = arith.constant 0 : i32
    %c0_i32_0 = arith.constant 0 : i32
    %c0_i32_1 = arith.constant 0 : i32
    return %c0_i32, %c0_i32_0 : i32, i32
  }
  func.func @transform_2(%arg0: i32) -> (i32, i32) {
    %c0_i32 = arith.constant 0 : i32
    %c0_i32_0 = arith.constant 0 : i32
    %c0_i32_1 = arith.constant 0 : i32
    return %c0_i32, %c0_i32_0 : i32, i32
  }
  func.func @transform_3(%arg0: i32) -> (i32, i32) {
    %c0_i32 = arith.constant 0 : i32
    %c0_i32_0 = arith.constant 0 : i32
    %c0_i32_1 = arith.constant 0 : i32
    return %c0_i32, %c0_i32_0 : i32, i32
  }
  func.func @transform_4(%arg0: i32) -> (i32, i32, i32) {
    %c0_i32 = arith.constant 0 : i32
    %c0_i32_0 = arith.constant 0 : i32
    %c0_i32_1 = arith.constant 0 : i32
    return %c0_i32, %arg0, %c0_i32_0 : i32, i32, i32
  }
  func.func @transform_5(%arg0: i32) -> (i32, i32, i32) {
    %c0_i32 = arith.constant 0 : i32
    %c0_i32_0 = arith.constant 0 : i32
    %c0_i32_1 = arith.constant 0 : i32
    return %c0_i32, %arg0, %c0_i32_0 : i32, i32, i32
  }
}

</mosaic_0001>

<bundles_post_ra>
// kernel: model_forward.1
= control target key start
LH: loop header
LB: loop body
LE: loop exit
PB: predicated region body
PF: predicated region fallthrough
CT: control target
= control target key end

     0   :  { %11 = vsyncpa [#allocation3], 0  ;;  %s980_s0 = inlined_call_operand.vmem [shape: f32[9,8,128], index: 0, kind: input, shape index: {}]   ;;  %s981_s1 = inlined_call_operand.vmem [shape: f32[9,6], index: 1, kind: input, shape index: {}]   ;;  %s982_s2 = inlined_call_operand.vmem [shape: f32[1,6], index: 2, kind: input, shape index: {}]   ;;  %s983_s3 = inlined_call_operand.vmem [shape: f32[3,3], index: 3, kind: input, shape index: {}]   ;;  %s984_s4 = inlined_call_operand.vmem [shape: f32[9,8,128], index: 4, kind: output, shape index: {0}]   ;;  %s985_s5 = inlined_call_operand.vmem [shape: f32[9,8,128], index: 5, kind: output, shape index: {1}]  }
   0x1   :  { %12 = vsyncpa [#allocation5], 0  ;;  %s33_s20 = sshll.u32 %s982_s2, 4  ;;  %s20_s23 = sshll.u32 %s981_s1, 4  ;;  %s34_s20 = int_to_ptr.vmem [resolvable:$true] %s33_s20  ;;  %s21_s23 = int_to_ptr.vmem [resolvable:$true] %s20_s23 }
   0x2   :  { %s546_s24 = scalar_lea.vmem %s34_s20, 16  ;;  %p551_p1 = scmp.lt.s32.totalorder %s34_s20, %s34_s20 }
   0x3   :  { %p547_p0 = scmp.ne.s32.totalorder %s34_s20, %s546_s24  ;;  %p552_p2 = scmp.lt.s32.totalorder %s546_s24, %s546_s24 }
   0x5   :  { %p553_p3 = por %p552_p2, %p551_p1 }
   0x7   :  { %p554_p4 = pnand %p553_p3, %p547_p0 }
   0x9   :  { %557 = shalt.err (!%p554_p4)
}
   0xa   :  { %s586_s25 = smov [#allocation4]   ;;  %s558_s26 = scalar_lea.vmem %s21_s23, 256 }
   0xb   :  { %36 = dma.vmem_to_smem %s34_s20, 16, %s586_s25, [#allocation5]  }
   0xc   :  { %p559_p5 = scmp.ne.s32.totalorder %s21_s23, %s558_s26  ;;  %p563_p6 = scmp.lt.s32.totalorder %s21_s23, %s21_s23 }
   0xd   :  { %p564_p7 = scmp.lt.s32.totalorder %s558_s26, %s558_s26 }
   0xf   :  { %p565_p8 = por %p564_p7, %p563_p6 }
  0x11   :  { %p566_p9 = pnand %p565_p8, %p559_p5 }
  0x13   :  { %569 = shalt.err (!%p566_p9)
}
  0x14   :  { %s587_s2 = smov [#allocation2]   ;;  %s588_s27 = smov 128  }
  0x15   :  { %s589_s1 = smov 8   ;;  %s43_s30 = sshll.u32 %s983_s3, 4  ;;  %s44_s30 = int_to_ptr.vmem [resolvable:$true] %s43_s30 }
  0x16   :  { %26 = dma.vmem_to_smem %s21_s23, 256, %s587_s2, [#allocation3], %s588_s27, %s588_s27, %s589_s1  }
  0x17   :  { %s570_s6 = scalar_lea.vmem %s44_s30, 64  ;;  %p575_p11 = scmp.lt.s32.totalorder %s44_s30, %s44_s30 }
  0x18   :  { %p571_p10 = scmp.ne.s32.totalorder %s44_s30, %s570_s6  ;;  %p576_p12 = scmp.lt.s32.totalorder %s570_s6, %s570_s6 }
  0x1a   :  { %p577_p13 = por %p576_p12, %p575_p11 }
  0x1c   :  { %p578_p0 = pnand %p577_p13, %p571_p10 }
  0x1e   :  { %581 = shalt.err (!%p578_p0)
}
  0x1f   :  { %s590_s7 = smov [#allocation6]  }
  0x20   :  { %46 = dma.vmem_to_smem %s44_s30, 64, %s590_s7, [#allocation5]  }
  0x21   :  { %582 = dma.done.wait [#allocation3], 256  }
  0x22   :  { %583 = vsyncadd [#allocation3], 4294967040 }
  0x23   :  { %584 = dma.done.wait [#allocation5], 80  }
  0x24   :  { %585 = vsyncadd [#allocation5], 4294967216 }
  0x25   :  { %56 = sfence }
  0x26   :  { %s74_s8 = sld [smem:[#allocation2]]  ;;  %v633_v0 = vld [vmem:[%s980_s0] sm:$0xff]  ;;  %v642_v1 = vld [vmem:[%s980_s0 + $0x8] sm:$0xff]  ;;  %v651_v2 = vld [vmem:[%s980_s0 + $0x10] sm:$0xff]  ;;  %s653_s22 = sld [smem:[#allocation2 + $0x1]] }
  0x27   :  { %s455_s9 = sld [smem:[#allocation2 + $0x80]]  ;;  %v658_v4 = vld [vmem:[%s980_s0 + $0x18] sm:$0xff]  ;;  %s661_s25 = sld [smem:[#allocation2 + $0x81]]  ;;  %v668_v7 = vld [vmem:[%s980_s0 + $0x20] sm:$0xff]  ;;  %v678_v10 = vld [vmem:[%s980_s0 + $0x28] sm:$0xff] }
  0x28   :  { %s456_s10 = sld [smem:[#allocation2 + $0x100]]  ;;  %s663_s26 = sld [smem:[#allocation2 + $0x101]]  ;;  %v697_v18 = vld [vmem:[%s980_s0 + $0x30] sm:$0xff]  ;;  %v717_v27 = vld [vmem:[%s980_s0 + $0x38] sm:$0xff]  ;;  %v722_v28 = vld [vmem:[%s980_s0 + $0x40] sm:$0xff] }
  0x29   :  { %s457_s11 = sld [smem:[#allocation2 + $0x180]]  ;;  %s671_s1 = sld [smem:[#allocation2 + $0x181]] }
  0x2a   :  { %s458_s3 = sld [smem:[#allocation2 + $0x200]]  ;;  %s673_s28 = sld [smem:[#allocation2 + $0x201]] }
  0x2b   :  { %s635_s14 = sld [smem:[#allocation2 + $0x280]]  ;;  %s681_s6 = sld [smem:[#allocation2 + $0x281]] }
  0x2c   :  { %s637_s15 = sld [smem:[#allocation2 + $0x300]]  ;;  %v75_v3 = vstv %s74_s8  ;;  %s683_s7 = sld [smem:[#allocation2 + $0x301]]  ;;  %v113_v24 = vstv %s653_s22 }
  0x2d   :  { %s644_s18 = sld [smem:[#allocation2 + $0x380]]  ;;  %v76_v5 = vmul.f32 %v75_v3, %v633_v0  ;;  %v78_v6 = vstv %s455_s9  ;;  %s687_s8 = sld [smem:[#allocation2 + $0x381]]  ;;  %v116_v25 = vstv %s661_s25  ;;  %v114_v30 = vmul.f32 %v113_v24, %v633_v0 }
  0x2e   :  { %s646_s19 = sld [smem:[#allocation2 + $0x400]]  ;;  %v79_v8 = vmul.f32 %v642_v1, %v78_v6  ;;  %v82_v9 = vstv %s456_s10  ;;  %s690_s9 = sld [smem:[#allocation2 + $0x401]]  ;;  %v120_v26 = vstv %s663_s26  ;;  %v117_v31 = vmul.f32 %v642_v1, %v116_v25 }
  0x2f   :  { %v83_v11 = vmul.f32 %v651_v2, %v82_v9  ;;  %v86_v12 = vstv %s457_s11  ;;  %s692_s10 = sld [smem:[#allocation2 + $0x2]]  ;;  %v121_v32 = vmul.f32 %v651_v2, %v120_v26  ;;  %v124_v33 = vstv %s671_s1  ;;  %s745_s23 = sld [smem:[#allocation4 + $0x1]] }
  0x30   :  { %v90_v13 = vstv %s458_s3  ;;  %v80_v14 = vadd.f32 %v79_v8, %v76_v5  ;;  %v87_v15 = vmul.f32 %v658_v4, %v86_v12  ;;  %s702_s12 = sld [smem:[#allocation2 + $0x82]]  ;;  %v128_v34 = vstv %s673_s28  ;;  %s747_s24 = sld [smem:[#allocation2 + $0x3]] }
  0x31   :  { %v94_v16 = vstv %s635_s14  ;;  %v91_v17 = vmul.f32 %v668_v7, %v90_v13  ;;  %s704_s13 = sld [smem:[#allocation2 + $0x102]]  ;;  %v132_v35 = vstv %s681_s6  ;;  %v118_v39 = vadd.f32 %v117_v31, %v114_v30  ;;  %s751_s25 = sld [smem:[#allocation2 + $0x83]] }
  0x32   :  { %v84_v19 = vadd.f32 %v83_v11, %v80_v14  ;;  %v95_v20 = vmul.f32 %v678_v10, %v94_v16  ;;  %v98_v21 = vstv %s637_s15  ;;  %s710_s14 = sld [smem:[#allocation2 + $0x182]]  ;;  %v136_v36 = vstv %s683_s7  ;;  %s757_s26 = sld [smem:[#allocation2 + $0x103]] }
  0x33   :  { %v102_v22 = vstv %s644_s18  ;;  %s712_s16 = sld [smem:[#allocation2 + $0x202]]  ;;  %v99_v38 = vmul.f32 %v697_v18, %v98_v21  ;;  %v125_v40 = vmul.f32 %v658_v4, %v124_v33  ;;  %v129_v43 = vmul.f32 %v668_v7, %v128_v34  ;;  %s759_s2 = sld [smem:[#allocation2 + $0x183]] }
  0x34   :  { %v106_v23 = vstv %s646_s19  ;;  %v88_v29 = vadd.f32 %v87_v15, %v84_v19  ;;  %s724_s19 = sld [smem:[#allocation4]]  ;;  %s729_s21 = sld [smem:[#allocation2 + $0x282]]  ;;  %v103_v41 = vmul.f32 %v717_v27, %v102_v22  ;;  %v133_v44 = vmul.f32 %v678_v10, %v132_v35 }
  0x35   :  { %s735_s22 = sld [smem:[#allocation2 + $0x302]]  ;;  %v107_v42 = vmul.f32 %v722_v28, %v106_v23  ;;  %v122_v46 = vadd.f32 %v121_v32, %v118_v39  ;;  %v137_v47 = vmul.f32 %v697_v18, %v136_v36  ;;  %v140_v48 = vstv %s687_s8  ;;  %s769_s1 = sld [smem:[#allocation2 + $0x203]] }
  0x36   :  { %s737_s0 = sld [smem:[#allocation2 + $0x382]]  ;;  %v92_v37 = vadd.f32 %v91_v17, %v88_v29  ;;  %v144_v49 = vstv %s690_s9  ;;  %v151_v50 = vstv %s692_s10  ;;  %v154_v51 = vstv %s702_s12  ;;  %s772_s28 = sld [smem:[#allocation2 + $0x283]] }
  0x37   :  { %v158_v52 = vstv %s704_s13  ;;  %v126_v54 = vadd.f32 %v125_v40, %v122_v46  ;;  %v152_v55 = vmul.f32 %v151_v50, %v633_v0  ;;  %v155_v56 = vmul.f32 %v642_v1, %v154_v51  ;;  %s763_s27 = sld [smem:[#allocation2 + $0x402]]  ;;  %s785_s30 = sld [smem:[#allocation2 + $0x303]] }
  0x38   :  { %v96_v45 = vadd.f32 %v95_v20, %v92_v37  ;;  %v159_v57 = vmul.f32 %v651_v2, %v158_v52  ;;  %v162_v58 = vstv %s710_s14  ;;  %v141_v6 = vmul.f32 %v717_v27, %v140_v48  ;;  %s778_s29 = sld [smem:[#allocation4 + $0x2]]  ;;  %s787_s6 = sld [smem:[#allocation2 + $0x4]] }
  0x39   :  { %v166_v59 = vstv %s712_s16  ;;  %v130_v62 = vadd.f32 %v129_v43, %v126_v54  ;;  %v156_v63 = vadd.f32 %v155_v56, %v152_v55  ;;  %v163_v3 = vmul.f32 %v658_v4, %v162_v58  ;;  %s791_s7 = sld [smem:[#allocation2 + $0x383]]  ;;  %s793_s8 = sld [smem:[#allocation2 + $0x84]] }
  0x3a   :  { %v100_v53 = vadd.f32 %v99_v38, %v96_v45  ;;  %v170_v60 = vstv %s729_s21  ;;  %v110_v5 = vstv %s724_s19  ;;  %v145_v12 = vmul.f32 %v722_v28, %v144_v49  ;;  %s799_s9 = sld [smem:[#allocation2 + $0x104]]  ;;  %s817_s12 = sld [smem:[#allocation2 + $0x403]] }
  0x3b   :  { %v174_v8 = vstv %s735_s22  ;;  %v134_v11 = vadd.f32 %v133_v44, %v130_v62  ;;  %v160_v13 = vadd.f32 %v159_v57, %v156_v63  ;;  %v167_v14 = vmul.f32 %v668_v7, %v166_v59  ;;  %s801_s10 = sld [smem:[#allocation2 + $0x184]]  ;;  %s831_s16 = sld [smem:[#allocation2 + $0x5]] }
  0x3c   :  { %v104_v61 = vadd.f32 %v103_v41, %v100_v53  ;;  %v178_v9 = vstv %s737_s0  ;;  %v148_v16 = vstv %s745_s23  ;;  %v171_v17 = vmul.f32 %v678_v10, %v170_v60  ;;  %s810_s11 = sld [smem:[#allocation2 + $0x204]]  ;;  %s833_s17 = sld [smem:[#allocation2 + $0x85]] }
  0x3d   :  { %v189_v19 = vstv %s747_s24  ;;  %v138_v20 = vadd.f32 %v137_v47, %v134_v11  ;;  %v164_v21 = vadd.f32 %v163_v3, %v160_v13  ;;  %v175_v22 = vmul.f32 %v697_v18, %v174_v8  ;;  %s813_s3 = sld [smem:[#allocation2 + $0x284]]  ;;  %s842_s20 = sld [smem:[#allocation2 + $0x105]] }
  0x3e   :  { %v108_v15 = vadd.f32 %v107_v42, %v104_v61  ;;  %v179_v23 = vmul.f32 %v717_v27, %v178_v9  ;;  %v190_v24 = vmul.f32 %v189_v19, %v633_v0  ;;  %v192_v25 = vstv %s751_s25  ;;  %s822_s13 = sld [smem:[#allocation2 + $0x304]]  ;;  %s844_s15 = sld [smem:[#allocation2 + $0x185]] }
  0x3f   :  { %v196_v26 = vstv %s757_s26  ;;  %v200_v29 = vstv %s759_s2  ;;  %v142_v30 = vadd.f32 %v141_v6, %v138_v20  ;;  %v168_v31 = vadd.f32 %v167_v14, %v164_v21  ;;  %s824_s14 = sld [smem:[#allocation2 + $0x384]]  ;;  %s848_s18 = sld [smem:[#allocation2 + $0x205]] }
  0x40   :  { %v182_v32 = vstv %s763_s27  ;;  %v193_v33 = vmul.f32 %v642_v1, %v192_v25  ;;  %v805_v34 = vadd.f32 %v110_v5, %v108_v15  ;;  %v197_v35 = vmul.f32 %v651_v2, %v196_v26  ;;  %s853_s19 = sld [smem:[#allocation2 + $0x404]]  ;;  %s858_s21 = sld [smem:[#allocation2 + $0x285]] }
  0x41   :  { %v201_v36 = vmul.f32 %v658_v4, %v200_v29  ;;  %v204_v37 = vstv %s769_s1  ;;  %v146_v38 = vadd.f32 %v145_v12, %v142_v30  ;;  %v172_v39 = vadd.f32 %v171_v17, %v168_v31  ;;  %s866_s22 = sld [smem:[#allocation2 + $0x305]]  ;;  %s883_s24 = sld [smem:[#allocation4 + $0x3]] }
  0x42   :  { %v194_v40 = vadd.f32 %v193_v33, %v190_v24  ;;  %v208_v41 = vstv %s772_s28  ;;  %v183_v42 = vmul.f32 %v722_v28, %v182_v32  ;;  %v186_v43 = vstv %s778_s29  ;;  %s873_s0 = sld [smem:[#allocation2 + $0x385]]  ;;  %s886_s25 = sld [smem:[#allocation4 + $0x4]] }
  0x43   :  { %v819_v44 = vadd.f32 %v148_v16, %v146_v38  ;;  %v176_v45 = vadd.f32 %v175_v22, %v172_v39  ;;  %v205_v47 = vmul.f32 %v668_v7, %v204_v37  ;;  %v302_v48 = vmul.f32 %v805_v34, %v805_v34  ;;  %s881_s23 = sld [smem:[#allocation2 + $0x405]] }
  0x44   :  { %v198_v46 = vadd.f32 %v197_v35, %v194_v40  ;;  %v209_v49 = vmul.f32 %v678_v10, %v208_v41  ;;  %v212_v50 = vstv %s785_s30  ;;  %v227_v51 = vstv %s787_s6  ;;  %s512_s26 = sld [smem:[#allocation4 + $0x5]]  ;;  %s357_s6 = sld [smem:[#allocation6]] }
  0x45   :  { %v180_v52 = vadd.f32 %v179_v23, %v176_v45  ;;  %v303_v53 = vmul.f32 %v819_v44, %v819_v44  ;;  %v228_v55 = vmul.f32 %v227_v51, %v633_v0  ;;  %v216_v56 = vstv %s791_s7  ;;  %s521_s7 = sld [smem:[#allocation6 + $0x1]] }
  0x46   :  { %v202_v54 = vadd.f32 %v201_v36, %v198_v46  ;;  %v230_v57 = vstv %s793_s8  ;;  %v234_v58 = vstv %s799_s9  ;;  %v238_v59 = vstv %s801_s10  ;;  %s522_s8 = sld [smem:[#allocation6 + $0x2]]  ;;  %s523_s9 = sld [smem:[#allocation6 + $0x80]] }
  0x47   :  { %v184_v60 = vadd.f32 %v183_v42, %v180_v52  ;;  %v213_v62 = vmul.f32 %v697_v18, %v212_v50  ;;  %v231_v63 = vmul.f32 %v642_v1, %v230_v57  ;;  %v304_v3 = vadd.f32 %v303_v53, %v302_v48  ;;  %s524_s10 = sld [smem:[#allocation6 + $0x81]] }
  0x48   :  { %v206_v61 = vadd.f32 %v205_v47, %v202_v54  ;;  %v235_v5 = vmul.f32 %v651_v2, %v234_v58  ;;  %v239_v6 = vmul.f32 %v658_v4, %v238_v59  ;;  %v242_v8 = vstv %s810_s11  ;;  %s525_s11 = sld [smem:[#allocation6 + $0x82]] }
  0x49   :  { %v855_v9 = vadd.f32 %v186_v43, %v184_v60  ;;  %v232_v12 = vadd.f32 %v231_v63, %v228_v55  ;;  %v246_v13 = vstv %s813_s3  ;;  %v217_v14 = vmul.f32 %v717_v27, %v216_v56  ;;  %s526_s3 = sld [smem:[#allocation6 + $0x100]] }
  0x4a   :  { %v210_v11 = vadd.f32 %v209_v49, %v206_v61  ;;  %v220_v15 = vstv %s817_s12  ;;  %v243_v19 = vmul.f32 %v668_v7, %v242_v8  ;;  %v250_v20 = vstv %s822_s13  ;;  %s527_s12 = sld [smem:[#allocation6 + $0x101]]  ;;  %s528_s13 = sld [smem:[#allocation6 + $0x102]] }
  0x4b   :  { %v305_v16 = vmul.f32 %v855_v9, %v855_v9  ;;  %v236_v17 = vadd.f32 %v235_v5, %v232_v12  ;;  %v247_v21 = vmul.f32 %v678_v10, %v246_v13  ;;  %v254_v22 = vstv %s824_s14 }
  0x4c   :  { %v265_v23 = vstv %s831_s16  ;;  %v268_v24 = vstv %s833_s17  ;;  %v214_v26 = vadd.f32 %v213_v62, %v210_v11  ;;  %v251_v31 = vmul.f32 %v697_v18, %v250_v20 }
  0x4d   :  { %v306_v25 = vadd.f32 %v305_v16, %v304_v3  ;;  %v240_v29 = vadd.f32 %v239_v6, %v236_v17  ;;  %v266_v30 = vmul.f32 %v265_v23, %v633_v0  ;;  %v269_v32 = vmul.f32 %v642_v1, %v268_v24 }
  0x4e   :  { %v272_v33 = vstv %s842_s20  ;;  %v276_v35 = vstv %s844_s15  ;;  %v280_v39 = vstv %s848_s18  ;;  %v258_v0 = vstv %s853_s19 }
  0x4f   :  { %v307_v36 = vmax.f32 %v306_v25, 1e-16  ;;  %v244_v37 = vadd.f32 %v243_v19, %v240_v29  ;;  %v273_v38 = vmul.f32 %v651_v2, %v272_v33  ;;  %v270_v40 = vadd.f32 %v269_v32, %v266_v30 }
  0x50   :  { %v277_v1 = vmul.f32 %v658_v4, %v276_v35  ;;  %v255_v42 = vmul.f32 %v717_v27, %v254_v22  ;;  %v284_v43 = vstv %s858_s21  ;;  %v221_v2 = vmul.f32 %v722_v28, %v220_v15 }
  0x51   :  { %542 = vrsqrt.f32 %v307_v36  ;;  %v248_v41 = vadd.f32 %v247_v21, %v244_v37  ;;  %v274_v45 = vadd.f32 %v273_v38, %v270_v40  ;;  %v281_v46 = vmul.f32 %v668_v7, %v280_v39 }
  0x52   :  { %v218_v47 = vadd.f32 %v217_v14, %v214_v26  ;;  %v259_v49 = vmul.f32 %v722_v28, %v258_v0  ;;  %v288_v50 = vstv %s866_s22  ;;  %v285_v4 = vmul.f32 %v678_v10, %v284_v43 }
  0x53   :  { %v252_v48 = vadd.f32 %v251_v31, %v248_v41  ;;  %v278_v51 = vadd.f32 %v277_v1, %v274_v45  ;;  %v292_v53 = vstv %s873_s0  ;;  %v289_v55 = vmul.f32 %v697_v18, %v288_v50 }
  0x54   :  { %v222_v56 = vadd.f32 %v221_v2, %v218_v47  ;;  %v296_v58 = vstv %s881_s23  ;;  %v224_v59 = vstv %s883_s24  ;;  %v262_v7 = vstv %s886_s25 }
  0x55   :  { %v256_v52 = vadd.f32 %v255_v42, %v252_v48  ;;  %v282_v54 = vadd.f32 %v281_v46, %v278_v51  ;;  %v293_v61 = vmul.f32 %v717_v27, %v292_v53  ;;  %v297_v63 = vmul.f32 %v722_v28, %v296_v58 }
  0x56   :  { %v225_v5 = vadd.f32 %v224_v59, %v222_v56  ;;  %v300_v12 = vstv %s512_s26  ;;  %v366_v26 = vstv %s357_s6  ;;  %v389_v29 = vstv %s523_s9 }
  0x57   :  { %v260_v57 = vadd.f32 %v259_v49, %v256_v52  ;;  %v286_v60 = vadd.f32 %v285_v4, %v282_v54  ;;  %v368_v30 = vstv %s521_s7  ;;  %v371_v31 = vstv %s522_s8 }
  0x58   :  { %v391_v32 = vstv %s524_s10  ;;  %v394_v33 = vstv %s525_s11  ;;  %v413_v35 = vstv %s526_s3  ;;  %v920_v36 = vstv %s527_s12 }
  0x59   :  { %v290_v62 = vadd.f32 %v289_v55, %v286_v60  ;;  %v263_v10 = vadd.f32 %v262_v7, %v260_v57  ;;  %v922_v37 = vstv %s528_s13 }
  0x5b   :  { %v543_v3 = vpop.eup %542  ;;  %v294_v8 = vadd.f32 %v293_v61, %v290_v62 }
  0x5c   :  { %v904_v6 = vmul.f32 %v543_v3, %v805_v34  ;;  %v310_v18 = vmul.f32 %v543_v3, %v819_v44  ;;  %v311_v11 = vmul.f32 %v543_v3, %v855_v9 }
  0x5d   :  { %v298_v27 = vadd.f32 %v297_v63, %v294_v8 }
  0x5e   :  { %340 = vst [vmem:[%s984_s4] sm:$0xff] %v904_v6  ;;  %v318_v28 = vmul.f32 %v904_v6, %v263_v10  ;;  %515 = vst [vmem:[%s984_s4 + $0x18] sm:$0xff] %v310_v18  ;;  %v319_v34 = vmul.f32 %v310_v18, %v225_v5  ;;  %v313_v9 = vmul.f32 %v311_v11, %v263_v10 }
  0x5f   :  { %518 = vst [vmem:[%s984_s4 + $0x30] sm:$0xff] %v311_v11  ;;  %v301_v44 = vadd.f32 %v300_v12, %v298_v27  ;;  %v315_v13 = vmul.f32 %v311_v11, %v225_v5  ;;  %v367_v39 = vmul.f32 %v366_v26, %v904_v6  ;;  %v375_v0 = vmul.f32 %v366_v26, %v310_v18 }
  0x60   :  { %v320_v16 = vsub.f32 %v318_v28, %v319_v34  ;;  %v382_v40 = vmul.f32 %v366_v26, %v311_v11  ;;  %v390_v1 = vmul.f32 %v389_v29, %v904_v6  ;;  %v399_v2 = vmul.f32 %v389_v29, %v310_v18 }
  0x61   :  { %v312_v14 = vmul.f32 %v310_v18, %v301_v44  ;;  %v316_v15 = vmul.f32 %v904_v6, %v301_v44  ;;  %v406_v45 = vmul.f32 %v389_v29, %v311_v11  ;;  %v414_v46 = vmul.f32 %v413_v35, %v904_v6 }
  0x62   :  { %v324_v22 = vmul.f32 %v320_v16, %v320_v16  ;;  %v423_v47 = vmul.f32 %v413_v35, %v310_v18  ;;  %v430_v48 = vmul.f32 %v413_v35, %v311_v11 }
  0x63   :  { %v314_v17 = vsub.f32 %v312_v14, %v313_v9  ;;  %v317_v19 = vsub.f32 %v315_v13, %v316_v15 }
  0x65   :  { %v321_v20 = vmul.f32 %v314_v17, %v314_v17  ;;  %v322_v21 = vmul.f32 %v317_v19, %v317_v19 }
  0x67   :  { %v323_v23 = vadd.f32 %v322_v21, %v321_v20 }
  0x69   :  { %v325_v24 = vadd.f32 %v324_v22, %v323_v23 }
  0x6b   :  { %v326_v25 = vmax.f32 %v325_v24, 1e-16 }
  0x6d   :  { %544 = vrsqrt.f32 %v326_v25 }
  0x77   :  { %v545_v38 = vpop.eup %544 }
  0x78   :  { %v329_v41 = vmul.f32 %v545_v38, %v317_v19  ;;  %v330_v42 = vmul.f32 %v545_v38, %v320_v16  ;;  %v328_v43 = vmul.f32 %v545_v38, %v314_v17 }
  0x7a   :  { %v331_v49 = vmul.f32 %v329_v41, %v311_v11  ;;  %v332_v50 = vmul.f32 %v330_v42, %v310_v18  ;;  %517 = vst [vmem:[%s984_s4 + $0x28] sm:$0xff] %v329_v41  ;;  %520 = vst [vmem:[%s984_s4 + $0x40] sm:$0xff] %v330_v42  ;;  %v334_v51 = vmul.f32 %v330_v42, %v904_v6 }
  0x7b   :  { %514 = vst [vmem:[%s984_s4 + $0x10] sm:$0xff] %v328_v43  ;;  %v335_v4 = vmul.f32 %v328_v43, %v311_v11  ;;  %v337_v52 = vmul.f32 %v328_v43, %v310_v18  ;;  %v338_v53 = vmul.f32 %v329_v41, %v904_v6  ;;  %v372_v54 = vmul.f32 %v371_v31, %v328_v43 }
  0x7c   :  { %v378_v55 = vmul.f32 %v371_v31, %v329_v41  ;;  %v333_v56 = vsub.f32 %v331_v49, %v332_v50  ;;  %v385_v58 = vmul.f32 %v371_v31, %v330_v42  ;;  %v395_v59 = vmul.f32 %v394_v33, %v328_v43 }
  0x7d   :  { %v336_v57 = vsub.f32 %v334_v51, %v335_v4  ;;  %v339_v7 = vsub.f32 %v337_v52, %v338_v53  ;;  %v402_v60 = vmul.f32 %v394_v33, %v329_v41  ;;  %v409_v61 = vmul.f32 %v394_v33, %v330_v42 }
  0x7e   :  { %v419_v62 = vmul.f32 %v922_v37, %v328_v43  ;;  %513 = vst [vmem:[%s984_s4 + $0x8] sm:$0xff] %v333_v56  ;;  %v369_v63 = vmul.f32 %v368_v30, %v333_v56  ;;  %v392_v5 = vmul.f32 %v391_v32, %v333_v56  ;;  %v416_v18 = vmul.f32 %v920_v36, %v333_v56 }
  0x7f   :  { %516 = vst [vmem:[%s984_s4 + $0x20] sm:$0xff] %v336_v57  ;;  %v376_v3 = vmul.f32 %v368_v30, %v336_v57  ;;  %v400_v10 = vmul.f32 %v391_v32, %v336_v57  ;;  %519 = vst [vmem:[%s984_s4 + $0x38] sm:$0xff] %v339_v7  ;;  %v383_v6 = vmul.f32 %v368_v30, %v339_v7 }
  0x80   :  { %v407_v8 = vmul.f32 %v391_v32, %v339_v7  ;;  %v424_v11 = vmul.f32 %v920_v36, %v336_v57  ;;  %v370_v12 = vadd.f32 %v369_v63, %v367_v39  ;;  %v393_v28 = vadd.f32 %v392_v5, %v390_v1 }
  0x81   :  { %v377_v27 = vadd.f32 %v376_v3, %v375_v0  ;;  %v401_v34 = vadd.f32 %v400_v10, %v399_v2  ;;  %v384_v44 = vadd.f32 %v383_v6, %v382_v40  ;;  %v417_v13 = vadd.f32 %v416_v18, %v414_v46 }
  0x82   :  { %v408_v9 = vadd.f32 %v407_v8, %v406_v45  ;;  %v425_v14 = vadd.f32 %v424_v11, %v423_v47  ;;  %v373_v15 = vadd.f32 %v372_v54, %v370_v12  ;;  %v396_v17 = vadd.f32 %v395_v59, %v393_v28 }
  0x83   :  { %v379_v16 = vadd.f32 %v378_v55, %v377_v27  ;;  %v403_v19 = vadd.f32 %v402_v60, %v401_v34  ;;  %v386_v20 = vadd.f32 %v385_v58, %v384_v44  ;;  %v420_v22 = vadd.f32 %v419_v62, %v417_v13 }
  0x84   :  { %v410_v21 = vadd.f32 %v409_v61, %v408_v9  ;;  %v426_v23 = vmul.f32 %v922_v37, %v329_v41  ;;  %374 = vst [vmem:[%s985_s5] sm:$0xff] %v373_v15  ;;  %531 = vst [vmem:[%s985_s5 + $0x18] sm:$0xff] %v396_v17  ;;  %v431_v24 = vmul.f32 %v920_v36, %v339_v7 }
  0x85   :  { %529 = vst [vmem:[%s985_s5 + $0x8] sm:$0xff] %v379_v16  ;;  %532 = vst [vmem:[%s985_s5 + $0x20] sm:$0xff] %v403_v19  ;;  %v433_v25 = vmul.f32 %v922_v37, %v330_v42 }
  0x86   :  { %530 = vst [vmem:[%s985_s5 + $0x10] sm:$0xff] %v386_v20  ;;  %533 = vst [vmem:[%s985_s5 + $0x28] sm:$0xff] %v410_v21  ;;  %v427_v26 = vadd.f32 %v426_v23, %v425_v14  ;;  %v432_v29 = vadd.f32 %v431_v24, %v430_v48 }
  0x87   :  { %534 = vst [vmem:[%s985_s5 + $0x30] sm:$0xff] %v420_v22 }
  0x88   :  { %535 = vst [vmem:[%s985_s5 + $0x38] sm:$0xff] %v427_v26  ;;  %v434_v30 = vadd.f32 %v433_v25, %v432_v29 }
  0x8a   :  { %536 = vst [vmem:[%s985_s5 + $0x40] sm:$0xff] %v434_v30 }
  0x8b   :  { %445 = vsyncpa [#allocation3], 1 }
  0x8c   :  { %446 = vsyncpa [#allocation5], 1 }

</bundles_post_ra>
